<compile_context>
chip_gen: v6e
topology: v6e:2x2x1
jax: 0.10.0
libtpu: 0.0.40
codegen_flags: <defaults>
</compile_context>

<pallas_src>
import functools

import jax
import jax.numpy as jnp
import numpy as np
from jax import lax
from jax.experimental import pallas as pl
from jax.experimental.pallas import tpu as pltpu

EPS = 1e-6  # GeMFreq eps


def _pow_pos(x, e):
    # x ** e for strictly-positive x (x is clamped to eps first); written as exp/log so
    # it lowers to plain EUP ops.
    return jnp.exp(jnp.log(x) * e)


def att_head_kernel(p_ref, x_ref, w1_ref, b1_ref, w2_ref, b2_ref,
                    pred_ref, logit_ref, frame_ref, acc_ref,
                    *, f_total, p_int=None):
    f = pl.program_id(1)
    p = p_ref[0, 0]

    # ---- GeMFreq partial: clamp(min=eps) ** p, summed over this freq block ----
    x = jnp.maximum(x_ref[...].astype(jnp.float32), EPS)       # (Bb, C, Fb, T)
    if p_int is not None:
        xp = x
        for _ in range(p_int - 1):     # integer exponent -> VPU multiplies (EUP free)
            xp = xp * x
    else:
        xp = _pow_pos(x, p)            # exp(p*log(x)) on the EUP
    partial = jnp.sum(xp, axis=2)      # (Bb, C, T): reduce this block's freq sublanes

    @pl.when(f == 0)
    def _():
        acc_ref[...] = jnp.zeros_like(acc_ref)

    acc_ref[...] += partial

    # ---- tail: runs once per batch block, on the last freq step ----
    @pl.when(f == pl.num_programs(1) - 1)
    def _():
        Bb, C, T = acc_ref.shape
        pooled = _pow_pos(acc_ref[...] * (1.0 / f_total), 1.0 / p)   # (Bb, C, T)

        # tiny in-kernel relayout (C*T per batch row, F-times smaller than x):
        # lanes become C for the MXU contraction.  Keep T a multiple of 8 so the
        # reshape stays tile-aligned.
        feat = jnp.transpose(pooled, (0, 2, 1)).reshape(Bb * T, C)   # (Bb*T, C)

        # dense_layers: Dropout(id) -> Linear(C->H) -> ReLU -> Dropout(id)
        h = jnp.dot(feat, w1_ref[...],
                    preferred_element_type=jnp.float32) + b1_ref[...]
        h = jnp.maximum(h, 0.0)                                      # (Bb*T, Hp)

        # fused attention || fix_scale 1x1 convs: one (Hp, 2*Np) matmul
        af = jnp.dot(h, w2_ref[...],
                     preferred_element_type=jnp.float32) + b2_ref[...]
        Np = af.shape[-1] // 2
        att = jnp.tanh(af[:, :Np]).reshape(Bb, T, Np)                # tanh(attention)
        fv = af[:, Np:].reshape(Bb, T, Np)                           # fix_scale(feat)

        # softmax over time (torch dim=-1 on (B, N, T) == axis=1 here)
        m = jnp.max(att, axis=1, keepdims=True)
        e = jnp.exp(att - m)
        inv = pl.reciprocal(jnp.sum(e, axis=1, keepdims=True), approx=True)  # EUP slot
        soft = e * inv                                               # (Bb, T, Np)

        sig = 1.0 / (1.0 + jnp.exp(-fv))                             # sigmoid(feat_v)
        pred_ref[...] = jnp.sum(sig * soft, axis=1, keepdims=True)   # (Bb, 1, Np)
        logit_ref[...] = jnp.sum(fv * soft, axis=1, keepdims=True)   # (Bb, 1, Np)
        frame_ref[...] = fv                                          # (Bb, T, Np)


def _pick_batch_block(B, block_b):
    # Largest divisor of B <= block_b, while forcing >= 2 grid steps on the parallel
    # batch axis whenever B > 1 (v7x has 2 TensorCores; also enables DMA/compute
    # overlap).  Using a divisor means x never needs a batch-padding copy.
    cap = max(1, min(block_b, B if B == 1 else (B + 1) // 2))
    for bb in range(cap, 0, -1):
        if B % bb == 0:
            return bb
    return 1


def _pick_f_block(F, sub_mult):
    # Freq is the reduction axis: use the smallest tile whose second-minor size is
    # aligned for the x dtype (8 f32 / 16 bf16 / 32 int8) and divides F; else full F.
    if F > sub_mult and F % sub_mult == 0:
        return sub_mult
    return F


def att_head_forward(x, p, w1, b1, wa, ba, wf, bf, *, block_b=8, f_block=None):
    """AttHead forward (eval mode, output_type=None, train_period == infer_period).

    x: (B, C, F, T) NCHW exactly as the PyTorch module consumes it -- no wrapper
       relayout.  Hand it over in bf16 if the producer can (halves the dominant HBM
       read + x double-buffer); accumulation is f32 either way.
    Weights in (in, out) layout: w1 (C,H), b1 (1,H), wa/wf (H,N), ba/bf (1,N).
    """
    B, C, F, T = x.shape
    H = w1.shape[1]
    N = wa.shape[1]

    # Integer-p fast path, gated on the actual checkpoint value (not a caller flag).
    p_int = None
    try:
        pv = float(jnp.asarray(p).reshape(-1)[0])
        if abs(pv - round(pv)) < 1e-6 and 1 <= int(round(pv)) <= 8:
            p_int = int(round(pv))
    except Exception:          # p is traced (inside jit) -> generic exp/log path
        p_int = None
    p_arr = jnp.asarray(p, jnp.float32).reshape(1, 1)

    # Lane-dense padding of hidden / class dims (zero pads are inert: relu(0)=0 rows
    # feed zero w2 rows, padded class columns are sliced off below).
    N_pad = ((N + 127) // 128) * 128
    H_pad = ((H + 127) // 128) * 128
    pad_n, pad_h = N_pad - N, H_pad - H
    f32 = jnp.float32
    w1p = jnp.pad(w1.astype(f32), ((0, 0), (0, pad_h)))                      # (C, Hp)
    b1p = jnp.pad(jnp.asarray(b1, f32).reshape(1, H), ((0, 0), (0, pad_h)))  # (1, Hp)
    w2 = jnp.concatenate([jnp.pad(wa.astype(f32), ((0, 0), (0, pad_n))),
                          jnp.pad(wf.astype(f32), ((0, 0), (0, pad_n)))], axis=1)
    w2 = jnp.pad(w2, ((0, pad_h), (0, 0)))                                   # (Hp, 2Np)
    b2 = jnp.concatenate(
        [jnp.pad(jnp.asarray(ba, f32).reshape(1, N), ((0, 0), (0, pad_n))),
         jnp.pad(jnp.asarray(bf, f32).reshape(1, N), ((0, 0), (0, pad_n)))], axis=1)

    itemsize = jnp.dtype(x.dtype).itemsize
    sub_mult = {4: 8, 2: 16, 1: 32}.get(itemsize, 8)
    Bb = _pick_batch_block(B, block_b)
    Fb = f_block if f_block is not None else _pick_f_block(F, sub_mult)
    assert F % Fb == 0, "f_block must divide F"
    grid = (B // Bb, F // Fb)

    # Explicit VMEM budget (v5e scoped default 16 MiB; v7x physical 64 MiB).
    vmem_est = (
        2 * Bb * C * Fb * T * itemsize                                 # x block (2 bufs)
        + 2 * 4 * (C * H_pad + H_pad + H_pad * 2 * N_pad + 2 * N_pad)  # weight blocks
        + 2 * 4 * Bb * (T + 2) * N_pad                                 # output blocks
        + 4 * Bb * C * T                                               # GeM accumulator
        + 4 * Bb * T * (2 * C + H_pad + 6 * N_pad)                     # tail temps
    )
    vmem_limit = int(min(100 * 2**20, max(32 * 2**20, 2 * vmem_est)))

    kernel = functools.partial(att_head_kernel, f_total=float(F), p_int=p_int)

    pred, logit, frame = pl.pallas_call(
        kernel,
        out_shape=[
            jax.ShapeDtypeStruct((B, 1, N_pad), jnp.float32),
            jax.ShapeDtypeStruct((B, 1, N_pad), jnp.float32),
            jax.ShapeDtypeStruct((B, T, N_pad), jnp.float32),
        ],
        grid=grid,
        in_specs=[
            pl.BlockSpec(memory_space=pltpu.MemorySpace.SMEM),        # p (1,1) scalar
            pl.BlockSpec((Bb, C, Fb, T), lambda b, f: (b, 0, f, 0)),  # x, native NCHW
            # TODO(synk): switch the grid-invariant weight specs to
            # pipeline_mode=pl.Buffered(1) to drop their second VMEM buffer.
            pl.BlockSpec((C, H_pad), lambda b, f: (0, 0)),            # w1
            pl.BlockSpec((1, H_pad), lambda b, f: (0, 0)),            # b1
            pl.BlockSpec((H_pad, 2 * N_pad), lambda b, f: (0, 0)),    # w_att || w_fix
            pl.BlockSpec((1, 2 * N_pad), lambda b, f: (0, 0)),        # b_att || b_fix
        ],
        out_specs=[
            pl.BlockSpec((Bb, 1, N_pad), lambda b, f: (b, 0, 0)),
            pl.BlockSpec((Bb, 1, N_pad), lambda b, f: (b, 0, 0)),
            pl.BlockSpec((Bb, T, N_pad), lambda b, f: (b, 0, 0)),
        ],
        scratch_shapes=[pltpu.VMEM((Bb, C, T), jnp.float32)],
        compiler_params=pltpu.CompilerParams(
            dimension_semantics=("parallel", "arbitrary"),
            vmem_limit_bytes=vmem_limit),
    )(p_arr, x, w1p, b1p, w2, b2)

    return {
        "clipwise_pred_long": pred[:, 0, :N],        # (B, N)
        "clipwise_logits_long": logit[:, 0, :N],     # (B, N)
        "framewise_logits_long": frame[:, :, :N],    # (B, T, N) == feat_v.permute(0,2,1)
    }


def att_head_reference(x, p, w1, b1, wa, ba, wf, bf):
    """Pure-JAX reference mirroring the PyTorch forward (eval, output_type=None)."""
    hi = lax.Precision.HIGHEST
    p = jnp.asarray(p, jnp.float32).reshape(())
    x = x.astype(jnp.float32)
    pooled = jnp.power(jnp.mean(jnp.power(jnp.maximum(x, EPS), p), axis=2), 1.0 / p)
    feat = jnp.transpose(pooled, (0, 2, 1))                           # (B, T, C)
    h = jnp.maximum(jnp.dot(feat, w1, precision=hi) + b1, 0.0)        # (B, T, H)
    att = jnp.tanh(jnp.dot(h, wa, precision=hi) + ba)                 # (B, T, N)
    fv = jnp.dot(h, wf, precision=hi) + bf                            # (B, T, N)
    soft = jax.nn.softmax(att, axis=1)                                # softmax over time
    return {
        "clipwise_pred_long": jnp.sum(jax.nn.sigmoid(fv) * soft, axis=1),
        "clipwise_logits_long": jnp.sum(fv * soft, axis=1),
        "framewise_logits_long": fv,
    }


if __name__ == "__main__":
    # Small shapes: batch=2, in_chans=4, freq=32 (2 reduction grid steps with bf16 x),
    # time=8, hidden=32, classes=16.
    B, C, F, T = 2, 4, 32, 8
    H, N = 32, 16

    key = jax.random.PRNGKey(0)
    kx, k1, k2, k3, k4, k5, k6 = jax.random.split(key, 7)

    x_f32 = jax.random.uniform(kx, (B, C, F, T), jnp.float32)    # backbone feature map
    x = x_f32.astype(jnp.bfloat16)   # producer-side bf16 hand-off (no wrapper x pass)

    p = jnp.full((1, 1), 3.0, jnp.float32)                       # GeM p parameter (init 3)
    w1 = jax.random.normal(k1, (C, H), jnp.float32) * 0.1        # Linear weight (in->hid)
    b1 = jax.random.normal(k2, (1, H), jnp.float32) * 0.1
    wa = jax.random.normal(k3, (H, N), jnp.float32) * 0.1        # attention 1x1 conv
    ba = jax.random.normal(k4, (1, N), jnp.float32) * 0.1
    wf = jax.random.normal(k5, (H, N), jnp.float32) * 0.1        # fix_scale 1x1 conv
    bf = jax.random.normal(k6, (1, N), jnp.float32) * 0.1

    out = att_head_forward(x, p, w1, b1, wa, ba, wf, bf)
    jax.block_until_ready(out)

    # Reference on the same (bf16-quantized) input isolates the kernel math; tolerance
    # covers the approx softmax reciprocal and any MXU f32 multi-pass differences.
    ref = att_head_reference(x, p, w1, b1, wa, ba, wf, bf)
    for name in out:
        np.testing.assert_allclose(np.asarray(out[name], np.float32),
                                   np.asarray(ref[name]),
                                   rtol=2e-3, atol=2e-3)

    print("KERNEL_OK")
</pallas_src>

<mosaic_0001>
module attributes {stable_mosaic.version = 11 : i64} {
  func.func @att_head_kernel(%arg0: i32, %arg1: i32, %arg2: memref<1x1xf32, #tpu.memory_space<smem>>, %arg3: memref<1x4x16x8xbf16, #tpu.memory_space<vmem>>, %arg4: memref<4x128xf32, #tpu.memory_space<vmem>>, %arg5: memref<1x128xf32, #tpu.memory_space<vmem>>, %arg6: memref<128x256xf32, #tpu.memory_space<vmem>>, %arg7: memref<1x256xf32, #tpu.memory_space<vmem>>, %arg8: memref<1x1x128xf32, #tpu.memory_space<vmem>>, %arg9: memref<1x1x128xf32, #tpu.memory_space<vmem>>, %arg10: memref<1x8x128xf32, #tpu.memory_space<vmem>>, %arg11: memref<1x4x8xf32, #tpu.memory_space<vmem>>) attributes {dimension_semantics = [#tpu.dimension_semantics<parallel>, #tpu.dimension_semantics<arbitrary>], iteration_bounds = array<i64: 2, 2>, scalar_prefetch = 0 : i64, scratch_operands = 1 : i64, tpu.core_type = #tpu.core_type<tc>, window_params = [{transform_indices = @transform_0, window_bounds = array<i64: 1, 1>}, {transform_indices = @transform_1, window_bounds = array<i64: 1, 4, 16, 8>}, {pipeline_mode = #tpu.pipeline_mode<synchronous>, transform_indices = @transform_2, window_bounds = array<i64: 4, 128>}, {pipeline_mode = #tpu.pipeline_mode<synchronous>, transform_indices = @transform_3, window_bounds = array<i64: 1, 128>}, {pipeline_mode = #tpu.pipeline_mode<synchronous>, transform_indices = @transform_4, window_bounds = array<i64: 128, 256>}, {pipeline_mode = #tpu.pipeline_mode<synchronous>, transform_indices = @transform_5, window_bounds = array<i64: 1, 256>}, {transform_indices = @transform_6, window_bounds = array<i64: 1, 1, 128>}, {transform_indices = @transform_7, window_bounds = array<i64: 1, 1, 128>}, {transform_indices = @transform_8, window_bounds = array<i64: 1, 8, 128>}]} {
    %c0 = arith.constant 0 : index
    %c0_0 = arith.constant 0 : index
    %0 = memref.load %arg2[%c0, %c0_0] : memref<1x1xf32, #tpu.memory_space<smem>>
    %c0_1 = arith.constant 0 : index
    %c0_2 = arith.constant 0 : index
    %c0_3 = arith.constant 0 : index
    %c0_4 = arith.constant 0 : index
    %1 = vector.load %arg3[%c0_1, %c0_2, %c0_3, %c0_4] : memref<1x4x16x8xbf16, #tpu.memory_space<vmem>>, vector<1x4x16x8xbf16>
    %2 = arith.extf %1 : vector<1x4x16x8xbf16> to vector<1x4x16x8xf32>
    %cst = arith.constant 9.99999997E-7 : f32
    %3 = vector.broadcast %cst : f32 to vector<1x4x16x8xf32>
    %4 = arith.maximumf %2, %3 : vector<1x4x16x8xf32>
    %5 = arith.mulf %4, %4 : vector<1x4x16x8xf32>
    %6 = arith.mulf %5, %4 : vector<1x4x16x8xf32>
    %cst_5 = arith.constant dense<0.000000e+00> : vector<1x4x8xf32>
    %7 = vector.multi_reduction <add>, %6, %cst_5 [2] : vector<1x4x16x8xf32> to vector<1x4x8xf32>
    %c0_i32 = arith.constant 0 : i32
    %8 = arith.cmpi eq, %arg1, %c0_i32 : i32
    %9 = arith.extui %8 : i1 to i32
    %c0_i32_6 = arith.constant 0 : i32
    %10 = arith.cmpi ne, %9, %c0_i32_6 : i32
    scf.if %10 {
      %cst_14 = arith.constant 0.000000e+00 : f32
      %17 = vector.broadcast %cst_14 : f32 to vector<1x4x8xf32>
      %c0_15 = arith.constant 0 : index
      %c0_16 = arith.constant 0 : index
      %c0_17 = arith.constant 0 : index
      %18 = vector.load %arg11[%c0_15, %c0_16, %c0_17] : memref<1x4x8xf32, #tpu.memory_space<vmem>>, vector<1x4x8xf32>
      tpu.vector_store %arg11[%c0_15, %c0_16, %c0_17], %17 {strides = array<i32>} : memref<1x4x8xf32, #tpu.memory_space<vmem>>, vector<1x4x8xf32>,
    } else {
    }
    %c0_7 = arith.constant 0 : index
    %c0_8 = arith.constant 0 : index
    %c0_9 = arith.constant 0 : index
    %11 = vector.load %arg11[%c0_7, %c0_8, %c0_9] : memref<1x4x8xf32, #tpu.memory_space<vmem>>, vector<1x4x8xf32>
    %12 = arith.addf %11, %7 : vector<1x4x8xf32>
    %c0_10 = arith.constant 0 : index
    %c0_11 = arith.constant 0 : index
    %c0_12 = arith.constant 0 : index
    %13 = vector.load %arg11[%c0_10, %c0_11, %c0_12] : memref<1x4x8xf32, #tpu.memory_space<vmem>>, vector<1x4x8xf32>
    tpu.vector_store %arg11[%c0_10, %c0_11, %c0_12], %12 {strides = array<i32>} : memref<1x4x8xf32, #tpu.memory_space<vmem>>, vector<1x4x8xf32>,
    %c1_i32 = arith.constant 1 : i32
    %14 = arith.cmpi eq, %arg1, %c1_i32 : i32
    %15 = arith.extui %14 : i1 to i32
    %c0_i32_13 = arith.constant 0 : i32
    %16 = arith.cmpi ne, %15, %c0_i32_13 : i32
    scf.if %16 {
      %c0_14 = arith.constant 0 : index
      %c0_15 = arith.constant 0 : index
      %c0_16 = arith.constant 0 : index
      %17 = vector.load %arg11[%c0_14, %c0_15, %c0_16] : memref<1x4x8xf32, #tpu.memory_space<vmem>>, vector<1x4x8xf32>
      %cst_17 = arith.constant 3.125000e-02 : f32
      %18 = vector.broadcast %cst_17 : f32 to vector<1x4x8xf32>
      %19 = arith.mulf %17, %18 : vector<1x4x8xf32>
      %cst_18 = arith.constant 1.000000e+00 : f32
      %20 = arith.divf %cst_18, %0 : f32
      %21 = math.log %19 : vector<1x4x8xf32>
      %22 = vector.broadcast %20 : f32 to vector<1x4x8xf32>
      %23 = arith.mulf %21, %22 : vector<1x4x8xf32>
      %24 = math.exp %23 : vector<1x4x8xf32>
      %25 = tpu.transpose %24, [0, 2, 1] : vector<1x4x8xf32> -> vector<1x8x4xf32>
      %26 = vector.shape_cast %25 : vector<1x8x4xf32> to vector<8x4xf32>
      %c0_19 = arith.constant 0 : index
      %c0_20 = arith.constant 0 : index
      %27 = vector.load %arg4[%c0_19, %c0_20] : memref<4x128xf32, #tpu.memory_space<vmem>>, vector<4x128xf32>
      %cst_21 = arith.constant dense<0.000000e+00> : vector<8x128xf32>
      %28 = tpu.matmul %26, %27, %cst_21 {dimension_numbers = #tpu.dot_dimension_numbers<[1], [0], [0], [1], [0, 0, 1, 1], [], []>} : vector<8x4xf32>, vector<4x128xf32>, vector<8x128xf32> -> vector<8x128xf32>
      %c0_22 = arith.constant 0 : index
      %c0_23 = arith.constant 0 : index
      %29 = vector.load %arg5[%c0_22, %c0_23] : memref<1x128xf32, #tpu.memory_space<vmem>>, vector<1x128xf32>
      %30 = vector.broadcast %29 : vector<1x128xf32> to vector<8x128xf32>
      %31 = arith.addf %28, %30 : vector<8x128xf32>
      %cst_24 = arith.constant 0.000000e+00 : f32
      %32 = vector.broadcast %cst_24 : f32 to vector<8x128xf32>
      %33 = arith.maximumf %31, %32 : vector<8x128xf32>
      %c0_25 = arith.constant 0 : index
      %c0_26 = arith.constant 0 : index
      %34 = vector.load %arg6[%c0_25, %c0_26] : memref<128x256xf32, #tpu.memory_space<vmem>>, vector<128x256xf32>
      %cst_27 = arith.constant dense<0.000000e+00> : vector<8x256xf32>
      %35 = tpu.matmul %33, %34, %cst_27 {dimension_numbers = #tpu.dot_dimension_numbers<[1], [0], [0], [1], [0, 0, 1, 1], [], []>} : vector<8x128xf32>, vector<128x256xf32>, vector<8x256xf32> -> vector<8x256xf32>
      %c0_28 = arith.constant 0 : index
      %c0_29 = arith.constant 0 : index
      %36 = vector.load %arg7[%c0_28, %c0_29] : memref<1x256xf32, #tpu.memory_space<vmem>>, vector<1x256xf32>
      %37 = vector.broadcast %36 : vector<1x256xf32> to vector<8x256xf32>
      %38 = arith.addf %35, %37 : vector<8x256xf32>
      %39 = vector.extract_strided_slice %38 {offsets = [0, 0], sizes = [8, 128], strides = [1, 1]} : vector<8x256xf32> to vector<8x128xf32>
      %40 = math.tanh %39 : vector<8x128xf32>
      %41 = vector.shape_cast %40 : vector<8x128xf32> to vector<1x8x128xf32>
      %42 = vector.extract_strided_slice %38 {offsets = [0, 128], sizes = [8, 128], strides = [1, 1]} : vector<8x256xf32> to vector<8x128xf32>
      %43 = vector.shape_cast %42 : vector<8x128xf32> to vector<1x8x128xf32>
      %cst_30 = arith.constant dense<0xFF800000> : vector<1x128xf32>
      %44 = vector.multi_reduction <maximumf>, %41, %cst_30 [1] : vector<1x8x128xf32> to vector<1x128xf32>
      %45 = vector.shape_cast %44 : vector<1x128xf32> to vector<1x1x128xf32>
      %46 = vector.broadcast %45 : vector<1x1x128xf32> to vector<1x8x128xf32>
      %47 = arith.subf %41, %46 : vector<1x8x128xf32>
      %48 = math.exp %47 : vector<1x8x128xf32>
      %cst_31 = arith.constant dense<0.000000e+00> : vector<1x128xf32>
      %49 = vector.multi_reduction <add>, %48, %cst_31 [1] : vector<1x8x128xf32> to vector<1x128xf32>
      %50 = vector.shape_cast %49 : vector<1x128xf32> to vector<1x1x128xf32>
      %51 = tpu.reciprocal %50 {approx = true} : vector<1x1x128xf32> -> vector<1x1x128xf32>
      %52 = vector.broadcast %51 : vector<1x1x128xf32> to vector<1x8x128xf32>
      %53 = arith.mulf %48, %52 : vector<1x8x128xf32>
      %cst_32 = arith.constant 0.000000e+00 : f32
      %54 = vector.broadcast %cst_32 : f32 to vector<1x8x128xf32>
      %55 = arith.subf %54, %43 : vector<1x8x128xf32>
      %56 = math.exp %55 : vector<1x8x128xf32>
      %cst_33 = arith.constant 1.000000e+00 : f32
      %57 = vector.broadcast %cst_33 : f32 to vector<1x8x128xf32>
      %58 = arith.addf %57, %56 : vector<1x8x128xf32>
      %cst_34 = arith.constant 1.000000e+00 : f32
      %59 = vector.broadcast %cst_34 : f32 to vector<1x8x128xf32>
      %60 = arith.divf %59, %58 : vector<1x8x128xf32>
      %61 = arith.mulf %60, %53 : vector<1x8x128xf32>
      %cst_35 = arith.constant dense<0.000000e+00> : vector<1x128xf32>
      %62 = vector.multi_reduction <add>, %61, %cst_35 [1] : vector<1x8x128xf32> to vector<1x128xf32>
      %63 = vector.shape_cast %62 : vector<1x128xf32> to vector<1x1x128xf32>
      %c0_36 = arith.constant 0 : index
      %c0_37 = arith.constant 0 : index
      %c0_38 = arith.constant 0 : index
      %64 = vector.load %arg8[%c0_36, %c0_37, %c0_38] : memref<1x1x128xf32, #tpu.memory_space<vmem>>, vector<1x1x128xf32>
      tpu.vector_store %arg8[%c0_36, %c0_37, %c0_38], %63 {strides = array<i32>} : memref<1x1x128xf32, #tpu.memory_space<vmem>>, vector<1x1x128xf32>,
      %65 = arith.mulf %43, %53 : vector<1x8x128xf32>
      %cst_39 = arith.constant dense<0.000000e+00> : vector<1x128xf32>
      %66 = vector.multi_reduction <add>, %65, %cst_39 [1] : vector<1x8x128xf32> to vector<1x128xf32>
      %67 = vector.shape_cast %66 : vector<1x128xf32> to vector<1x1x128xf32>
      %c0_40 = arith.constant 0 : index
      %c0_41 = arith.constant 0 : index
      %c0_42 = arith.constant 0 : index
      %68 = vector.load %arg9[%c0_40, %c0_41, %c0_42] : memref<1x1x128xf32, #tpu.memory_space<vmem>>, vector<1x1x128xf32>
      tpu.vector_store %arg9[%c0_40, %c0_41, %c0_42], %67 {strides = array<i32>} : memref<1x1x128xf32, #tpu.memory_space<vmem>>, vector<1x1x128xf32>,
      %c0_43 = arith.constant 0 : index
      %c0_44 = arith.constant 0 : index
      %c0_45 = arith.constant 0 : index
      %69 = vector.load %arg10[%c0_43, %c0_44, %c0_45] : memref<1x8x128xf32, #tpu.memory_space<vmem>>, vector<1x8x128xf32>
      tpu.vector_store %arg10[%c0_43, %c0_44, %c0_45], %43 {strides = array<i32>} : memref<1x8x128xf32, #tpu.memory_space<vmem>>, vector<1x8x128xf32>,
    } else {
    }
    return
  }
  func.func @transform_0(%arg0: i32, %arg1: i32) -> (i32, i32) {
    %c0_i32 = arith.constant 0 : i32
    %c0_i32_0 = arith.constant 0 : i32
    %c0_i32_1 = arith.constant 0 : i32
    return %c0_i32, %c0_i32_0 : i32, i32
  }
  func.func @transform_1(%arg0: i32, %arg1: i32) -> (i32, i32, i32, i32) {
    %c0_i32 = arith.constant 0 : i32
    %c0_i32_0 = arith.constant 0 : i32
    %c0_i32_1 = arith.constant 0 : i32
    return %arg0, %c0_i32, %arg1, %c0_i32_0 : i32, i32, i32, i32
  }
  func.func @transform_2(%arg0: i32, %arg1: i32) -> (i32, i32) {
    %c0_i32 = arith.constant 0 : i32
    %c0_i32_0 = arith.constant 0 : i32
    %c0_i32_1 = arith.constant 0 : i32
    return %c0_i32, %c0_i32_0 : i32, i32
  }
  func.func @transform_3(%arg0: i32, %arg1: i32) -> (i32, i32) {
    %c0_i32 = arith.constant 0 : i32
    %c0_i32_0 = arith.constant 0 : i32
    %c0_i32_1 = arith.constant 0 : i32
    return %c0_i32, %c0_i32_0 : i32, i32
  }
  func.func @transform_4(%arg0: i32, %arg1: i32) -> (i32, i32) {
    %c0_i32 = arith.constant 0 : i32
    %c0_i32_0 = arith.constant 0 : i32
    %c0_i32_1 = arith.constant 0 : i32
    return %c0_i32, %c0_i32_0 : i32, i32
  }
  func.func @transform_5(%arg0: i32, %arg1: i32) -> (i32, i32) {
    %c0_i32 = arith.constant 0 : i32
    %c0_i32_0 = arith.constant 0 : i32
    %c0_i32_1 = arith.constant 0 : i32
    return %c0_i32, %c0_i32_0 : i32, i32
  }
  func.func @transform_6(%arg0: i32, %arg1: i32) -> (i32, i32, i32) {
    %c0_i32 = arith.constant 0 : i32
    %c0_i32_0 = arith.constant 0 : i32
    %c0_i32_1 = arith.constant 0 : i32
    return %arg0, %c0_i32, %c0_i32_0 : i32, i32, i32
  }
  func.func @transform_7(%arg0: i32, %arg1: i32) -> (i32, i32, i32) {
    %c0_i32 = arith.constant 0 : i32
    %c0_i32_0 = arith.constant 0 : i32
    %c0_i32_1 = arith.constant 0 : i32
    return %arg0, %c0_i32, %c0_i32_0 : i32, i32, i32
  }
  func.func @transform_8(%arg0: i32, %arg1: i32) -> (i32, i32, i32) {
    %c0_i32 = arith.constant 0 : i32
    %c0_i32_0 = arith.constant 0 : i32
    %c0_i32_1 = arith.constant 0 : i32
    return %arg0, %c0_i32, %c0_i32_0 : i32, i32, i32
  }
}

</mosaic_0001>

<bundles_post_ra>
// kernel: tpu_custom_call.1
= control target key start
LH: loop header
LB: loop body
LE: loop exit
PB: predicated region body
PF: predicated region fallthrough
CT: control target
= control target key end

     0   :  { %s1714_s0 = inlined_call_operand.<no memory space> [shape: f32[1,1], index: 0, kind: input, shape index: {}]   ;;  %s1715_s1 = inlined_call_operand.vmem [shape: bf16[2,4,32,8], index: 1, kind: input, shape index: {}]   ;;  %s1716_s2 = inlined_call_operand.vmem [shape: f32[4,128], index: 2, kind: input, shape index: {}]   ;;  %s1717_s3 = inlined_call_operand.vmem [shape: f32[1,128], index: 3, kind: input, shape index: {}]   ;;  %s1718_s4 = inlined_call_operand.hbm [shape: f32[128,256], index: 4, kind: input, shape index: {}]   ;;  %s1719_s5 = inlined_call_operand.vmem [shape: f32[1,256], index: 5, kind: input, shape index: {}]   ;;  %s1720_s6 = inlined_call_operand.hbm [shape: f32[2,1,128], index: 6, kind: output, shape index: {0}]   ;;  %s1721_s7 = inlined_call_operand.hbm [shape: f32[2,1,128], index: 7, kind: output, shape index: {1}]   ;;  %s1722_s8 = inlined_call_operand.hbm [shape: f32[2,8,128], index: 8, kind: output, shape index: {2}]  }
   0x1   :  { %1733 = sst [smem:[#allocation22_spill]] %s1715_s1 }
   0x2   :  { %1734 = sst [smem:[#allocation23_spill]] %s1720_s6 }
   0x3   :  { %1735 = sst [smem:[#allocation24_spill]] %s1722_s8 }
   0x4   :  { %14 = sst [smem:[#allocation3]] %s1714_s0 }
   0x5   :  { %15 = vsyncpa [#allocation6], 0 }
   0x6   :  { %16 = vsyncpa [#allocation7], 0 }
   0x7   :  { %18 = vsyncpa [#allocation7 + $0x1], 0 }
   0x8   :  { %19 = vsyncpa [#allocation10], 0 }
   0x9   :  { %21 = vsyncpa [#allocation10 + $0x1], 0  ;;  %s1440_s29 = smov 0   ;;  %s1442_s30 = smov 0  }
   0xa   :  { %s1444_s9 = smov 0   ;;  %s1446_s10 = smov 0  }
   0xb   :  { %s1448_s11 = smov 0   ;;  %s1450_s12 = smov 0  }
   0xc   :  { %s1452_s13 = smov 0   ;;  %s1454_s0 = smov 0  }
   0xd   :  { %s1456_s14 = smov 0   ;;  %s1458_s15 = smov 0  }
   0xe LB: > { %1736 = sst [smem:[#allocation15_spill]] %s1345_s29  ;;  %s1491_s16 = sadd.s32 4294967295, %s1381_s15   ;;  %s1381_s15 = sphi %s1458_s15, %s27_s15   ;;  %s1377_s14 = sphi %s1456_s14, %s1769_s14   ;;  %s1373_s0 = sphi %s1454_s0, %s1768_s0   ;;  %s1369_s13 = sphi %s1452_s13, %s1767_s13   ;;  %s1365_s12 = sphi %s1450_s12, %s1766_s12   ;;  %s1361_s11 = sphi %s1448_s11, %s1765_s11   ;;  %s1357_s10 = sphi %s1446_s10, %s1764_s10   ;;  %s1353_s9 = sphi %s1444_s9, %s1758_s9   ;;  %s1349_s30 = sphi %s1442_s30, %s1763_s30   ;;  %s1345_s29 = sphi %s1440_s29, %s1762_s29  }
   0xf   : > { %1737 = sst [smem:[#allocation16_spill]] %s1353_s9  ;;  %s1725_s17 = sadd.s32 4294967294, %s1381_s15  }
  0x10   : > { %s36_s18 = sadd.s32 1, %s1373_s0  ;;  %s39_s19 = sadd.s32 1, %s1377_s14 }
  0x11   : > { %p37_p0 = scmp.ge.s32.totalorder %s36_s18, 2  ;;  %s69_s20 = sadd.s32 1, %s1361_s11 }
  0x12   : > { %p76_p1 = scmp.ne.s32.totalorder %s1361_s11, %s1357_s10  ;;  %p77_p2 = scmp.eq.s32.totalorder %s1381_s15, 0 }
  0x13   : > { %s1771_s18 = smov (%p37_p0, %s36_s18), 0  ;;  %s1773_s19 = smov (!%p37_p0, %s39_s19), %s1377_s14 }
  0x14   : > { %1738 = sst [smem:[#allocation17_spill]] %s1771_s18  ;;  %s65_s21 = ssub.s32 %s1373_s0, %s1771_s18 }
  0x15   : > { %p1505_p3 = por %p77_p2, %p76_p1  ;;  %p41_p4 = scmp.ge.s32.totalorder %s1773_s19, 2 }
  0x16   : > { %s179_s23 = sadd.s32 1, %s1353_s9  ;;  %p189_p5 = scmp.ne.s32.totalorder %s1353_s9, %s1349_s30 }
  0x17   : > { %p190_p6 = scmp.eq.s32.totalorder %s1491_s16, 3  ;;  %s1775_s19 = smov (%p41_p4, %s1773_s19), 0 }
  0x18   : > { %1740 = sst [smem:[#allocation18_spill]] %s1775_s19  ;;  %p195_p8 = scmp.ne.s32.totalorder %s1349_s30, %s1345_s29 }
  0x19   : > { %p1515_p7 = por %p190_p6, %p189_p5  ;;  %s64_s25 = ssub.s32 %s1377_s14, %s1775_s19 }
  0x1a   : > { %p196_p9 = scmp.eq.s32.totalorder %s1725_s17, 3  ;;  %s66_s26 = sor.u32 %s65_s21, %s64_s25 }
  0x1b   : > { %s1741_s24 = scalar_select %p1515_p7, 1, 0 }
  0x1c   : > { %p177_p10 = scmp.eq.s32.totalorder %s64_s25, 0  ;;  %p67_p11 = scmp.eq.s32.totalorder %s66_s26, 0 }
  0x1d   : > { %p1525_p12 = por %p196_p9, %p195_p8  ;;  %p1008_p13 = scmp.ge.s32.totalorder %s1381_s15, 1 }
  0x1e   : > { %s1530_s28 = scalar_select %p177_p10, %s1353_s9, %s179_s23  }
  0x1f   : > { %s1742_s27 = scalar_select %p1525_p12, 1, 0 }
  0x20   : > { %1744 = sst [smem:[#allocation20_spill]] %s1530_s28  ;;  %p255_p0 = scmp.lt.s32.totalorder %s1381_s15, 5 }
  0x21   : > { %1743 = sst [smem:[#allocation19_spill]] %s1742_s27  ;;  %p1082_p1 = scmp.eq.s32.totalorder %s1491_s16, 0 }
  0x22   : > { %s1533_s18 = scalar_select %p67_p11, %s1361_s11, %s69_s20  }
  0x23   : > { %p1538_p2 = pnand %p1008_p13, %p255_p0  ;;  %s1383_s17 = smov [#allocation5]  }
  0x24   : > { %1745 = sst [smem:[#allocation21_spill]] %s1533_s18  ;;  %s276_s21 = sshll.u32 %s1383_s17, 4  ;;  %s277_s21 = int_to_ptr.vmem [resolvable:$true] %s276_s21 }
  0x25   : > { %p1068_p4 = pneg %p1538_p2  ;;  %s1198_s23 = scalar_lea.vmem %s277_s21, 4096 }
  0x26   : > { %p1199_p8 = scmp.ne.s32.totalorder %s277_s21, %s1198_s23  ;;  %p1206_p11 = scmp.lt.s32.totalorder %s277_s21, %s277_s21 }
  0x27   : > { %p1069_p5 = pnand %p1082_p1, %p1068_p4  ;;  %p1207_p12 = scmp.lt.s32.totalorder %s1198_s23, %s1198_s23 }
  0x29   : > { %p1189_p6 = pneg %p1069_p5  ;;  %p1208_p7 = por %p1207_p12, %p1206_p11 }
  0x2b   : > { %p1201_p9 = pnand %p1199_p8, %p1189_p6 }
  0x2d   : > { %p1202_p10 = pneg %p1201_p9 }
  0x2f   : > { %p1209_p13 = pnand %p1208_p7, %p1202_p10 }
  0x31   : > { %1212 = shalt.err (!%p1209_p13)
}
  0x32   : > { %s1384_s20 = smov 256   ;;  %s1385_s25 = smov 16  }
  0x33   : > { %1071 = dma.hbm_to_vmem [thread:$0]  (!%p1069_p5), %s1718_s4, 4096, %s277_s21, [#allocation6], %s1384_s20, %s1384_s20, %s1385_s25  }
  0x34   : > { %p1010_p0 = scmp.ge.s32.totalorder %s1381_s15, 4 }
  0x36   : > { %289 = sbr.rel (%p1010_p0) target bundleno = 71 (0x47), region = 36 }
  0x3b   : > { %292 = sbr.rel (!%p1505_p3) target bundleno = 71 (0x47), region = 40  ;;  %s294_s17 = sand.u32 (%p1505_p3), 1, %s1361_s11  }
  0x3c   : > { %s1012_s23 = sshll.u32 (%p1505_p3), %s1373_s0, 1  ;;  %s1011_s18 = sshll.u32 (%p1505_p3), %s294_s17, 5 }
  0x3d   : > { %s1013_s28 = sshll.u32 (%p1505_p3), %s1377_s14, 4  ;;  %s1747_s1 = sld [smem:[#allocation22_spill]] (%p1505_p3) }
  0x3e   : > { %s299_s9 = sadd.s32 (%p1505_p3), %s1013_s28, %s1012_s23  ;;  %s296_s21 = scalar_lea.vmem (%p1505_p3), [#allocation4], %s1011_s18 }
  0x3f   : > { %s1014_s27 = sshll.u32 (%p1505_p3), %s299_s9, 2 }
  0x43   : > { %s301_s19 = scalar_lea.vmem %s1747_s1, %s1014_s27 }
  0x44   : > { %v318_v0 = vld [vmem:[%s301_s19] sm:$0xff]   ;;  %v322_v1 = vld [vmem:[%s301_s19 + $0x10] sm:$0xff]  }
  0x45   : > { %v326_v2 = vld [vmem:[%s301_s19 + $0x20] sm:$0xff]   ;;  %319 = vst [vmem:[%s296_s21] sm:$0xff] %v318_v0   ;;  %323 = vst [vmem:[%s296_s21 + $0x8] sm:$0xff] %v322_v1   ;;  %v330_v3 = vld [vmem:[%s301_s19 + $0x30] sm:$0xff]  }
  0x46   : > { %327 = vst [vmem:[%s296_s21 + $0x10] sm:$0xff] %v326_v2   ;;  %331 = vst [vmem:[%s296_s21 + $0x18] sm:$0xff] %v330_v3  }
  0x47 PF: > { %376 = sbr.rel (%p1538_p2) target bundleno = 873 (0x369), region = 81  ;;  %s379_s9 = sand.u32 (!%p1538_p2), 1, %s1357_s10  }
  0x48   : > { %s1016_s22 = sshll.u32 (!%p1538_p2), %s379_s9, 5 }
  0x49   : > { %s381_s6 = scalar_lea.vmem (!%p1538_p2), [#allocation4], %s1016_s22 }
  0x4c   : > { %1332 = dma.done.wait (%p1082_p1), [#allocation6], 4096  }
  0x4d   : > { %1334 = vsyncadd (%p1082_p1), [#allocation6], 4294963200  ;;  %s1566_s8 = sand.u32 1, %s1349_s30   ;;  %s1569_s27 = sld [smem:[#allocation3]]  ;;  %v1031_v4 = vld [vmem:[%s381_s6] sm:$0xff]   ;;  %v1046_v5 = vld [vmem:[%s381_s6 + $0x8] sm:$0xff]  }
  0x4e   : > { %s1018_s18 = sshll.u32 %s1566_s8, 3  ;;  %v1047_v6 = vld [vmem:[%s381_s6 + $0x10] sm:$0xff]   ;;  %vm466_vm0 = vcmask 64512   ;;  %v1032_v7 = vunpack.c.l.bf16 %v1031_v4  ;;  %v1033_v8 = vunpack.c.h.bf16 %v1031_v4  ;;  %v1036_v9 = vunpack.c.l.bf16 %v1046_v5  ;;  %v1048_v11 = vld [vmem:[%s381_s6 + $0x18] sm:$0xff]   ;;  %s1732_s29 = scalar_lea.vmem [#allocation8], %s1566_s8 }
  0x4f   : > { %v1037_v10 = vunpack.c.h.bf16 %v1046_v5  ;;  %v1040_v12 = vunpack.c.l.bf16 %v1047_v6  ;;  %v1041_v13 = vunpack.c.h.bf16 %v1047_v6  ;;  %v1044_v14 = vunpack.c.l.bf16 %v1048_v11  ;;  %s416_s10 = scalar_lea.vmem [#allocation9], %s1566_s8  ;;  %s1583_s28 = scalar_lea.vmem [#allocation11], %s1018_s18 }
  0x50   : > { %v1045_v15 = vunpack.c.h.bf16 %v1048_v11  ;;  %v442_v16 = vmax.f32 %v1032_v7, 1e-06  ;;  %v443_v17 = vmax.f32 %v1033_v8, 1e-06  ;;  %v444_v18 = vmax.f32 %v1036_v9, 1e-06 }
  0x51   : > { %v445_v19 = vmax.f32 %v1037_v10, 1e-06  ;;  %v446_v20 = vmax.f32 %v1040_v12, 1e-06  ;;  %v447_v21 = vmax.f32 %v1041_v13, 1e-06 }
  0x52   : > { %v448_v22 = vmax.f32 %v1044_v14, 1e-06  ;;  %v449_v23 = vmax.f32 %v1045_v15, 1e-06  ;;  %v450_v24 = vmul.f32 %v442_v16, %v442_v16  ;;  %v451_v25 = vmul.f32 %v443_v17, %v443_v17  ;;  %p1019_p3 = scmp.ne.s32.totalorder %s1365_s12, 0 }
  0x53   : > { %v452_v26 = vmul.f32 %v444_v18, %v444_v18  ;;  %v453_v27 = vmul.f32 %v445_v19, %v445_v19  ;;  %v454_v28 = vmul.f32 %v446_v20, %v446_v20  ;;  %v455_v29 = vmul.f32 %v447_v21, %v447_v21 }
  0x54   : > { %v456_v30 = vmul.f32 %v448_v22, %v448_v22  ;;  %v457_v31 = vmul.f32 %v449_v23, %v449_v23  ;;  %v458_v32 = vmul.f32 %v450_v24, %v442_v16  ;;  %v459_v33 = vmul.f32 %v451_v25, %v443_v17 }
  0x55   : > { %v460_v34 = vmul.f32 %v452_v26, %v444_v18  ;;  %v461_v35 = vmul.f32 %v453_v27, %v445_v19  ;;  %v462_v36 = vmul.f32 %v454_v28, %v446_v20  ;;  %v463_v37 = vmul.f32 %v455_v29, %v447_v21 }
  0x56   : > { %v464_v38 = vmul.f32 %v456_v30, %v448_v22  ;;  %v465_v39 = vmul.f32 %v457_v31, %v449_v23  ;;  %v467_v40 = vsel %vm466_vm0, %v458_v32, 0.0  ;;  %v468_v41 = vsel %vm466_vm0, %v459_v33, 0.0 }
  0x57   : > { %v469_v42 = vadd.f32 %v468_v41, %v467_v40  ;;  %v476_v43 = vsel %vm466_vm0, %v460_v34, 0.0  ;;  %v477_v44 = vsel %vm466_vm0, %v461_v35, 0.0  ;;  %v485_v45 = vsel %vm466_vm0, %v462_v36, 0.0 }
  0x58   : > { %v478_v46 = vadd.f32 %v477_v44, %v476_v43  ;;  %v486_v47 = vsel %vm466_vm0, %v463_v37, 0.0  ;;  %v494_v48 = vsel %vm466_vm0, %v464_v38, 0.0  ;;  %v495_v49 = vsel %vm466_vm0, %v465_v39, 0.0 }
  0x59   : > { %v470_v50 = vrot.slane %v469_v42, 4  ;;  %v487_v51 = vadd.f32 %v486_v47, %v485_v45  ;;  %v496_v52 = vadd.f32 %v495_v49, %v494_v48 }
  0x5a   : > { %v479_v53 = vrot.slane %v478_v46, 4 }
  0x5b   : > { %v471_v54 = vadd.f32 %v470_v50, %v469_v42  ;;  %v488_v55 = vrot.slane %v487_v51, 4  ;;  %v497_v56 = vrot.slane %v496_v52, 4 }
  0x5c   : > { %v480_v57 = vadd.f32 %v479_v53, %v478_v46 }
  0x5d   : > { %v472_v58 = vrot.slane %v471_v54, 2  ;;  %v489_v59 = vadd.f32 %v488_v55, %v487_v51  ;;  %v498_v60 = vadd.f32 %v497_v56, %v496_v52 }
  0x5e   : > { %v481_v61 = vrot.slane %v480_v57, 2 }
  0x5f   : > { %v473_v62 = vadd.f32 %v472_v58, %v471_v54  ;;  %v490_v63 = vrot.slane %v489_v59, 2  ;;  %v499_v0 = vrot.slane %v498_v60, 2 }
  0x60   : > { %v482_v1 = vadd.f32 %v481_v61, %v480_v57 }
  0x61   : > { %v474_v2 = vrot.slane %v473_v62, 1  ;;  %v491_v3 = vadd.f32 %v490_v63, %v489_v59  ;;  %v500_v4 = vadd.f32 %v499_v0, %v498_v60  ;;  %506 = sbr.rel (%p1019_p3) target bundleno = 104 (0x68), region = 93 }
  0x62   : > { %v483_v5 = vrot.slane %v482_v1, 1 }
  0x63   : > { %v475_v6 = vadd.f32 %v474_v2, %v473_v62  ;;  %v492_v7 = vrot.slane %v491_v3, 1  ;;  %v501_v8 = vrot.slane %v500_v4, 1 }
  0x64   : > { %v484_v9 = vadd.f32 %v483_v5, %v482_v1 }
  0x65   : > { %v493_v10 = vadd.f32 %v492_v7, %v491_v3  ;;  %v502_v11 = vadd.f32 %v501_v8, %v500_v4 }
  0x66   : > { %vm507_vm1 = vcmask 60416   ;;  %v1386_v12 = vmov 0.0  }
  0x67   : > { %508 = vst.msk [vmem:[#allocation2] sm:$0xf] %vm507_vm1, %v1386_v12 }
  0x68 PF: > { %vm514_vm2 = vcmask 1041409   ;;  %vm516_vm3 = vcmask 1042434   ;;  %vm518_vm4 = vcmask 1043459   ;;  %vm522_vm5 = vcmask 60416   ;;  %p1020_p7 = scmp.ne.s32.totalorder %s1365_s12, 1 }
  0x69   : > { %v515_v14 = vsel %vm514_vm2, %v484_v9, %v475_v6 }
  0x6a   : > { %v517_v15 = vsel %vm516_vm3, %v493_v10, %v515_v14 }
  0x6b   : > { %v519_v16 = vsel %vm518_vm4, %v502_v11, %v517_v15 }
  0x6d   : > { %527 = sbr.rel (%p1020_p7) target bundleno = 802 (0x322), region = 97 }
  0x6e   : > { %v509_v13 = vld [vmem:[#allocation2] sm:$0xf] }
  0x6f   : > { %v521_v17 = vadd.f32 %v519_v16, %v509_v13 }
  0x71   : > { %523 = vst.msk [vmem:[#allocation2] sm:$0xf] %vm522_vm5, %v521_v17 }
  0x72   : > { %v530_v18 = vstv %s1569_s27  ;;  %v571_v19 = vld [vmem:[%s1716_s2] sm:$0xf]  ;;  %vm583_vm6 = vcmask 1043456   ;;  %v1387_v20 = vmov 0.0   ;;  %vm1388_vm7 = vmmov 0   ;;  %v688_v30 = vld [vmem:[#allocation5 + $0xf0] sm:$0xff] }
  0x73   : > { %1171 = vrcp.f32 %v530_v18  ;;  %1051 = vmatprep.subr.mxu0 %v1387_v20  ;;  %766 = vmatprep.mubr.f32.mxu1 %v1387_v20  ;;  %v689_v29 = vld [vmem:[#allocation5 + $0xf8] sm:$0xff]  ;;  %v687_v31 = vld [vmem:[#allocation5 + $0xe8] sm:$0xff]  ;;  %v686_v32 = vld [vmem:[#allocation5 + $0xe0] sm:$0xff]  ;;  %vm579_vm8 = vcmask 31744   ;;  %v692_v4 = vlaneseq }
  0x74   : > { %1052 = vmatpush3.msk.msra.mxu0 %vm583_vm6, %v571_v19  ;;  %1053 = vmatprep.mubr.msk.f32.mxu0 %vm1388_vm7, %v1387_v20  ;;  %v685_v34 = vld [vmem:[#allocation5 + $0xd8] sm:$0xff]  ;;  %v684_v35 = vld [vmem:[#allocation5 + $0xd0] sm:$0xff]  ;;  %v683_v36 = vld [vmem:[#allocation5 + $0xc8] sm:$0xff] }
  0x75   : > { %702 = vmatprep.subr.mxu1 %v689_v29  ;;  %v682_v37 = vld [vmem:[#allocation5 + $0xc0] sm:$0xff]  ;;  %v681_v38 = vld [vmem:[#allocation5 + $0xb8] sm:$0xff]  ;;  %v680_v39 = vld [vmem:[#allocation5 + $0xb0] sm:$0xff]  ;;  %v693_v5 = vshrl.u32 %v692_v4, 7 }
  0x76   : > { %703 = vmatpush1.msra.mxu1 %v688_v30  ;;  %v679_v40 = vld [vmem:[#allocation5 + $0xa8] sm:$0xff]  ;;  %v678_v41 = vld [vmem:[#allocation5 + $0xa0] sm:$0xff]  ;;  %v677_v42 = vld [vmem:[#allocation5 + $0x98] sm:$0xff] }
  0x77   : > { %704 = vmatprep.subr.mxu1 %v687_v31  ;;  %v676_v43 = vld [vmem:[#allocation5 + $0x90] sm:$0xff]  ;;  %v675_v44 = vld [vmem:[#allocation5 + $0x88] sm:$0xff]  ;;  %v674_v45 = vld [vmem:[#allocation5 + $0x80] sm:$0xff]  ;;  %v694_v6 = vsub.s32 0, %v693_v5  ;;  %v698_v8 = vsub.s32 1, %v693_v5 }
  0x78   : > { %v528_v22 = vld [vmem:[#allocation2] sm:$0xf]  ;;  %705 = vmatpush1.msra.mxu1 %v686_v32  ;;  %v672_v47 = vld [vmem:[#allocation5 + $0x70] sm:$0xff]  ;;  %v671_v48 = vld [vmem:[#allocation5 + $0x68] sm:$0xff] }
  0x79   : > { %v529_v23 = vmul.f32 0.03125, %v528_v22  ;;  %706 = vmatprep.subr.mxu1 %v685_v34  ;;  %v673_v46 = vld [vmem:[#allocation5 + $0x78] sm:$0xff]  ;;  %v670_v49 = vld [vmem:[#allocation5 + $0x60] sm:$0xff]  ;;  %v668_v51 = vld [vmem:[#allocation5 + $0x50] sm:$0xff] }
  0x7a   : > { %707 = vmatpush1.msra.mxu1 %v684_v35  ;;  %v669_v50 = vld [vmem:[#allocation5 + $0x58] sm:$0xff]  ;;  %v667_v52 = vld [vmem:[#allocation5 + $0x48] sm:$0xff]  ;;  %v666_v53 = vld [vmem:[#allocation5 + $0x40] sm:$0xff] }
  0x7b   : > { %1173 = vlog2.f32 %v529_v23  ;;  %708 = vmatprep.subr.mxu1 %v683_v36  ;;  %v665_v54 = vld [vmem:[#allocation5 + $0x38] sm:$0xff]  ;;  %v664_v55 = vld [vmem:[#allocation5 + $0x30] sm:$0xff]  ;;  %v663_v56 = vld [vmem:[#allocation5 + $0x28] sm:$0xff] }
  0x7c   : > { %709 = vmatpush1.msra.mxu1 %v682_v37  ;;  %v662_v58 = vld [vmem:[#allocation5 + $0x20] sm:$0xff]  ;;  %v661_v59 = vld [vmem:[#allocation5 + $0x18] sm:$0xff]  ;;  %v660_v60 = vld [vmem:[#allocation5 + $0x10] sm:$0xff] }
  0x7d   : > { %710 = vmatprep.subr.mxu1 %v681_v38  ;;  %v659_v61 = vld [vmem:[#allocation5 + $0x8] sm:$0xff]  ;;  %v658_v62 = vld [vmem:[#allocation5] sm:$0xff]  ;;  %v1021_v63 = vld [vmem:[%s1717_s3] ss:$0 sm:$0xff] }
  0x7e   : > { %711 = vmatpush1.msra.mxu1 %v680_v39  ;;  %v690_v7 = vld [vmem:[%s1719_s5] sm:$0x3] }
  0x7f   : > { %712 = vmatprep.subr.mxu1 %v679_v40  ;;  %v695_v9 = vrot.slane %v690_v7, %v694_v6  ;;  %v699_v10 = vrot.slane %v690_v7, %v698_v8 }
  0x80   : > { %v1172_v21 = vpop.eup %1171  ;;  %713 = vmatpush1.msra.mxu1 %v678_v41 }
  0x81   : > { %1056 = vpush %v1172_v21  ;;  %714 = vmatprep.subr.mxu1 %v677_v42 }
  0x82   : > { %715 = vmatpush1.msra.mxu1 %v676_v43 }
  0x83   : > { %716 = vmatprep.subr.mxu1 %v675_v44 }
  0x84   : > { %717 = vmatpush1.msra.mxu1 %v674_v45 }
  0x85   : > { %718 = vmatprep.subr.mxu1 %v673_v46 }
  0x86   : > { %719 = vmatpush1.msra.mxu1 %v672_v47 }
  0x87   : > { %720 = vmatprep.subr.mxu1 %v671_v48 }
  0x88   : > { %v1174_v24 = vpop.eup %1173  ;;  %721 = vmatpush1.msra.mxu1 %v670_v49 }
  0x89   : > { %v534_v25 = vmul.f32 0.6931472, %v1174_v24  ;;  %722 = vmatprep.subr.mxu1 %v669_v50 }
  0x8a   : > { %723 = vmatpush1.msra.mxu1 %v668_v51 }
  0x8b   : > { %724 = vmatprep.subr.mxu1 %v667_v52 }
  0x8c   : > { %725 = vmatpush1.msra.mxu1 %v666_v53 }
  0x8d   : > { %726 = vmatprep.subr.mxu1 %v665_v54 }
  0x8e   : > { %727 = vmatpush1.msra.mxu1 %v664_v55 }
  0x8f   : > { %728 = vmatprep.subr.mxu1 %v663_v56 }
  0x90   : > { %729 = vmatpush1.msra.mxu1 %v662_v58 }
  0x91   : > { %730 = vmatprep.subr.mxu1 %v661_v59 }
  0x92   : > { %731 = vmatpush1.msra.mxu1 %v660_v60 }
  0x93   : > { %732 = vmatprep.subr.mxu1 %v659_v61 }
  0x94   : > { %733 = vmatpush1.msra.mxu1 %v658_v62 }
  0xb2   : > { %s1057_s12 = spop %1056 }
  0xb3   : > { %v535_v26 = vstv %s1057_s12 }
  0xb4   : > { %v536_v27 = vmul.f32 %v535_v26, %v534_v25 }
  0xb6   : > { %v537_v28 = vmul.f32 1.442695, %v536_v27 }
  0xb8   : > { %1175 = vpow2.f32 %v537_v28 }
  0xc5   : > { %v1176_v33 = vpop.eup %1175 }
  0xc6   : > { %539 = vxpose.xlu0.b32.start.end [1/1] (short) (narrow) %v1176_v33, 8 }
 0x142   : > { %v555_v57 = vpop.trf.xlu0 }
 0x143   : > { %1054 = vmatmul.mubr.msk.f32.vlgmr.msra.gmra.mxu0 %vm579_vm8, %v555_v57 }
 0x203   : > { %v653_v0 = vpop.f32.mrf.mxu0 }
 0x204   : > { %v654_v1 = vadd.f32 %v1021_v63, %v653_v0 }
 0x205   : > { %v1055_v2 = vpop.f32.mrf.mxu0 }
 0x206   : > { %v657_v3 = vmax.f32 %v654_v1, 0.0 }
 0x208   : > { %767 = vmatmul.mubr.f32.vlgmr.msra.gmra.mxu1 %v657_v3 }
 0x2c8   : > { %v768_v11 = vpop.f32.mrf.mxu1 }
 0x2c9   : > { %v769_v12 = vadd.f32 %v768_v11, %v695_v9 }
 0x2ca   : > { %v770_v13 = vpop.f32.mrf.mxu1 }
 0x2cb   : > { %1177 = vtanh.f32 %v769_v12  ;;  %v771_v14 = vadd.f32 %v770_v13, %v699_v10 }
 0x2cd   : > { %813 = vst [vmem:[%s1583_s28] sm:$0xff] %v771_v14  ;;  %v791_v24 = vsub.f32 0.0, %v771_v14 }
 0x2cf   : > { %v792_v25 = vmul.f32 1.442695, %v791_v24 }
 0x2d8   : > { %v1178_v15 = vpop.eup %1177 }
 0x2d9   : > { %v774_v16 = vrot.slane %v1178_v15, 4 }
 0x2db   : > { %v775_v17 = vmax.f32 %v1178_v15, %v774_v16 }
 0x2dd   : > { %v776_v18 = vrot.slane %v775_v17, 2 }
 0x2df   : > { %v777_v19 = vmax.f32 %v775_v17, %v776_v18 }
 0x2e1   : > { %v778_v20 = vrot.slane %v777_v19, 1 }
 0x2e3   : > { %v779_v21 = vmax.f32 %v777_v19, %v778_v20 }
 0x2e5   : > { %v780_v22 = vsub.f32 %v1178_v15, %v779_v21 }
 0x2e7   : > { %v781_v23 = vmul.f32 1.442695, %v780_v22 }
 0x2e9   : > { %1179 = vpow2.f32 %v781_v23 }
 0x2ea   : > { %1181 = vpow2.f32 %v792_v25 }
 0x2f6   : > { %v1180_v26 = vpop.eup %1179 }
 0x2f7   : > { %v783_v27 = vrot.slane %v1180_v26, 4  ;;  %v1182_v31 = vpop.eup %1181 }
 0x2f8   : > { %v794_v34 = vadd.f32 1.0, %v1182_v31 }
 0x2f9   : > { %v784_v28 = vadd.f32 %v1180_v26, %v783_v27 }
 0x2fb   : > { %v785_v29 = vrot.slane %v784_v28, 2 }
 0x2fd   : > { %v786_v30 = vadd.f32 %v785_v29, %v784_v28 }
 0x2ff   : > { %v787_v32 = vrot.slane %v786_v30, 1 }
 0x301   : > { %v788_v33 = vadd.f32 %v787_v32, %v786_v30 }
 0x303   : > { %1183 = vrcp.f32 %v788_v33 }
 0x304   : > { %1185 = vrcp.f32 %v794_v34 }
 0x310   : > { %v1184_v35 = vpop.eup %1183 }
 0x311   : > { %v790_v36 = vmul.f32 %v1184_v35, %v1180_v26  ;;  %v1186_v37 = vpop.eup %1185 }
 0x313   : > { %v797_v38 = vmul.f32 %v1186_v37, %v790_v36  ;;  %v805_v39 = vmul.f32 %v790_v36, %v771_v14 }
 0x315   : > { %v798_v40 = vrot.slane %v797_v38, 4  ;;  %v806_v41 = vrot.slane %v805_v39, 4 }
 0x317   : > { %v799_v42 = vadd.f32 %v798_v40, %v797_v38  ;;  %v807_v43 = vadd.f32 %v806_v41, %v805_v39 }
 0x319   : > { %v800_v44 = vrot.slane %v799_v42, 2  ;;  %v808_v45 = vrot.slane %v807_v43, 2 }
 0x31b   : > { %v801_v46 = vadd.f32 %v800_v44, %v799_v42  ;;  %v809_v47 = vadd.f32 %v808_v45, %v807_v43 }
 0x31d   : > { %v802_v48 = vrot.slane %v801_v46, 1  ;;  %v810_v49 = vrot.slane %v809_v47, 1 }
 0x31f   : > { %v803_v50 = vadd.f32 %v802_v48, %v801_v46  ;;  %v811_v51 = vadd.f32 %v810_v49, %v809_v47 }
 0x321   : > { %804 = vst [vmem:[%s1732_s29] sm:$0x1] %v803_v50  ;;  %812 = vst [vmem:[%s416_s10] sm:$0x1] %v811_v51 }
 0x322 PF: > { %s818_s21 = sand.u32 1, %s1491_s16   ;;  %s1025_s9 = sshll.u32 %s1369_s13, 4 }
 0x323   : > { %s1607_s18 = scalar_lea.hbm %s1721_s7, %s1025_s9  ;;  %s849_s27 = sshll.u32 %s416_s10, 4  ;;  %s850_s27 = int_to_ptr.vmem [resolvable:$true] %s849_s27 }
 0x324   : > { %s1748_s12 = sld [smem:[#allocation23_spill]]  ;;  %s1616_s23 = scalar_lea.sflag [#allocation10], %s818_s21 }
 0x325   : > { %s1213_s19 = scalar_lea.vmem %s850_s27, 16  ;;  %p1750_p1 = scmp.ne.s32.totalorder %s1741_s24, 0 }
 0x326   : > { %p1214_p12 = scmp.ne.s32.totalorder %s850_s27, %s1213_s19  ;;  %s1389_s16 = smov [#allocation9]  }
 0x327   : > { %s1217_s29 = sshll.u32 %s1389_s16, 4  ;;  %s1218_s29 = int_to_ptr.vmem [resolvable:$false] %s1217_s29 }
 0x328   : > { %p1215_p2 = pnand %p1214_p12, %p1750_p1  ;;  %s1219_s22 = scalar_lea.vmem %s1218_s29, 32 }
 0x329   : > { %p1220_p5 = scmp.lt.s32.totalorder %s850_s27, %s1218_s29  ;;  %p1221_p6 = scmp.lt.s32.totalorder %s1219_s22, %s1213_s19 }
 0x32a   : > { %s1749_s26 = smov %s1748_s12  ;;  %s1614_s17 = scalar_lea.hbm %s1748_s12, %s1025_s9 }
 0x32b   : > { %p1216_p4 = pneg %p1215_p2  ;;  %p1222_p8 = por %p1221_p6, %p1220_p5 }
 0x32d   : > { %p1223_p9 = pnand %p1222_p8, %p1216_p4 }
 0x32f   : > { %1226 = shalt.err (!%p1223_p9)
}
 0x330   : > { %s1227_s10 = scalar_lea.hbm %s1607_s18, 16  ;;  %s1231_s6 = scalar_lea.hbm %s1721_s7, 32 }
 0x331   : > { %p1228_p10 = scmp.ne.s32.totalorder %s1607_s18, %s1227_s10  ;;  %p1232_p0 = scmp.lt.s32.totalorder %s1607_s18, %s1721_s7 }
 0x332   : > { %p1233_p3 = scmp.lt.s32.totalorder %s1231_s6, %s1227_s10 }
 0x333   : > { %p1229_p11 = pnand %p1228_p10, %p1750_p1 }
 0x334   : > { %p1234_p7 = por %p1233_p3, %p1232_p0 }
 0x335   : > { %p1230_p13 = pneg %p1229_p11 }
 0x337   : > { %p1235_p12 = pnand %p1234_p7, %p1230_p13 }
 0x339   : > { %1238 = shalt.err (!%p1235_p12)
}
 0x33a   : > { %1063 = dma.vmem_to_hbm [thread:$0]  (%p1750_p1), %s850_s27, 16, %s1607_s18, %s1616_s23  }
 0x33b   : > { %s1751_s29 = scalar_lea.vmem [#allocation8], %s1566_s8  ;;  %s1027_s19 = sshll.u32 %s1369_s13, 7 }
 0x33c   : > { %s836_s12 = sshll.u32 %s1751_s29, 4  ;;  %s1752_s21 = sld [smem:[#allocation24_spill]]  ;;  %s837_s12 = int_to_ptr.vmem [resolvable:$true] %s836_s12 }
 0x33d   : > { %s815_s9 = scalar_lea.sflag [#allocation7], %s1566_s8  ;;  %s1239_s6 = scalar_lea.vmem %s837_s12, 16 }
 0x33e   : > { %p1240_p2 = scmp.ne.s32.totalorder %s837_s12, %s1239_s6  ;;  %s1390_s20 = smov [#allocation8]  }
 0x33f   : > { %s1243_s25 = sshll.u32 %s1390_s20, 4  ;;  %s1244_s25 = int_to_ptr.vmem [resolvable:$false] %s1243_s25 }
 0x340   : > { %p1241_p4 = pnand %p1240_p2, %p1750_p1  ;;  %s1245_s1 = scalar_lea.vmem %s1244_s25, 32 }
 0x341   : > { %p1246_p6 = scmp.lt.s32.totalorder %s837_s12, %s1244_s25  ;;  %p1247_p8 = scmp.lt.s32.totalorder %s1245_s1, %s1239_s6 }
 0x342   : > { %s1641_s10 = scalar_lea.hbm %s1752_s21, %s1027_s19  ;;  %p1242_p5 = pneg %p1241_p4 }
 0x343   : > { %p1248_p9 = por %p1247_p8, %p1246_p6 }
 0x345   : > { %p1249_p10 = pnand %p1248_p9, %p1242_p5 }
 0x347   : > { %1252 = shalt.err (!%p1249_p10)
}
 0x348   : > { %s1253_s13 = scalar_lea.hbm %s1614_s17, 16  ;;  %s1257_s27 = scalar_lea.hbm %s1749_s26, 32 }
 0x349   : > { %p1254_p11 = scmp.ne.s32.totalorder %s1614_s17, %s1253_s13  ;;  %p1258_p3 = scmp.lt.s32.totalorder %s1614_s17, %s1749_s26 }
 0x34a   : > { %p1259_p7 = scmp.lt.s32.totalorder %s1257_s27, %s1253_s13 }
 0x34b   : > { %p1255_p13 = pnand %p1254_p11, %p1750_p1 }
 0x34c   : > { %p1260_p12 = por %p1259_p7, %p1258_p3 }
 0x34d   : > { %p1256_p0 = pneg %p1255_p13 }
 0x34f   : > { %p1261_p2 = pnand %p1260_p12, %p1256_p0 }
 0x351   : > { %1264 = shalt.err (!%p1261_p2)
}
 0x352   : > { %1062 = dma.vmem_to_hbm [thread:$0]  (%p1750_p1), %s837_s12, 16, %s1614_s17, %s815_s9  }
 0x353   : > { %s862_s1 = sshll.u32 %s1583_s28, 4  ;;  %s1391_s22 = smov [#allocation11]   ;;  %s863_s1 = int_to_ptr.vmem [resolvable:$true] %s862_s1 }
 0x354   : > { %s1265_s16 = scalar_lea.vmem %s863_s1, 128  ;;  %s1269_s6 = sshll.u32 %s1391_s22, 4  ;;  %s1270_s6 = int_to_ptr.vmem [resolvable:$false] %s1269_s6 }
 0x355   : > { %p1266_p4 = scmp.ne.s32.totalorder %s863_s1, %s1265_s16  ;;  %s1271_s20 = scalar_lea.vmem %s1270_s6, 256 }
 0x356   : > { %p1272_p8 = scmp.lt.s32.totalorder %s863_s1, %s1270_s6  ;;  %p1273_p9 = scmp.lt.s32.totalorder %s1271_s20, %s1265_s16 }
 0x357   : > { %p1267_p5 = pnand %p1266_p4, %p1750_p1 }
 0x358   : > { %p1274_p10 = por %p1273_p9, %p1272_p8 }
 0x359   : > { %p1268_p6 = pneg %p1267_p5 }
 0x35b   : > { %p1275_p11 = pnand %p1274_p10, %p1268_p6 }
 0x35d   : > { %1278 = shalt.err (!%p1275_p11)
}
 0x35e   : > { %s1279_s28 = scalar_lea.hbm %s1641_s10, 128  ;;  %s1283_s9 = scalar_lea.hbm %s1752_s21, 256 }
 0x35f   : > { %p1280_p13 = scmp.ne.s32.totalorder %s1641_s10, %s1279_s28  ;;  %p1284_p7 = scmp.lt.s32.totalorder %s1641_s10, %s1752_s21 }
 0x360   : > { %p1285_p12 = scmp.lt.s32.totalorder %s1283_s9, %s1279_s28 }
 0x361   : > { %p1281_p0 = pnand %p1280_p13, %p1750_p1 }
 0x362   : > { %p1286_p2 = por %p1285_p12, %p1284_p7 }
 0x363   : > { %p1282_p3 = pneg %p1281_p0 }
 0x365   : > { %p1287_p4 = pnand %p1286_p2, %p1282_p3 }
 0x367   : > { %1290 = shalt.err (!%p1287_p4)
}
 0x368   : > { %1064 = dma.vmem_to_hbm [thread:$0]  (%p1750_p1), %s863_s1, 128, %s1641_s10, %s1616_s23  }
 0x369 PF: > { %s1753_s8 = sld [smem:[#allocation15_spill]]  ;;  %p1084_p5 = scmp.ge.s32.totalorder %s1381_s15, 2 }
 0x36a   : > { %s1754_s18 = sld [smem:[#allocation19_spill]] }
 0x36f   : > { %s874_s27 = sand.u32 1, %s1753_s8  }
 0x370   : > { %p1755_p6 = scmp.ne.s32.totalorder %s1754_s18, 0  ;;  %s875_s29 = scalar_lea.sflag [#allocation7], %s874_s27 }
 0x372   : > { %p1073_p8 = pnand %p1084_p5, %p1755_p6 }
 0x374   : > { %p1074_p9 = pneg %p1073_p8 }
 0x376   : > { %1336 = dma.done.wait (%p1074_p9), %s875_s29, 16  }
 0x377   : > { %1338 = vsyncadd (%p1074_p9), %s875_s29, 4294967280  ;;  %s1756_s19 = sadd.s32 4294967294, %s1381_s15  }
 0x378   : > { %s882_s16 = sand.u32 1, %s1756_s19  }
 0x379   : > { %s883_s22 = scalar_lea.sflag [#allocation10], %s882_s16 }
 0x37a   : > { %1340 = dma.done.wait (%p1074_p9), %s883_s22, 144  }
 0x37b   : > { %1342 = vsyncadd (%p1074_p9), %s883_s22, 4294967152  ;;  %s27_s15 = sadd.s32 1, %s1381_s15   ;;  %s1757_s24 = sld [smem:[#allocation16_spill]] }
 0x37c   : > { %p24_p1 = scmp.ge.s32.totalorder %s27_s15, 6   ;;  %s1758_s9 = sld [smem:[#allocation20_spill]] }
 0x37d   : > { %s1759_s23 = sld [smem:[#allocation21_spill]]  ;;  %s1762_s29 = smov %s1349_s30 }
 0x37e   : > { %s1760_s1 = sld [smem:[#allocation17_spill]]  ;;  %s1764_s10 = smov %s1361_s11 }
 0x37f   : > { %s1761_s6 = sld [smem:[#allocation18_spill]]  ;;  %s1766_s12 = smov %s1373_s0 }
 0x380   : > { %s1767_s13 = smov %s1377_s14 }
 0x381   : > { %s1763_s30 = smov %s1757_s24  ;;  %26 = sbr.rel (!%p24_p1) target bundleno = 14 (0xe), region = 170 }
 0x383   : > { %s1765_s11 = smov %s1759_s23 }
 0x384   : > { %s1768_s0 = smov %s1760_s1 }
 0x385   : > { %s1769_s14 = smov %s1761_s6 }
 0x386   :  { %896 = vsyncpa [#allocation6], 1 }
 0x387   :  { %898 = vsyncpa [#allocation6 + $0x1], 1 }
 0x388   :  { %899 = vsyncpa [#allocation7], 1 }
 0x389   :  { %901 = vsyncpa [#allocation7 + $0x1], 1 }
 0x38a   :  { %902 = vsyncpa [#allocation10], 1 }
 0x38b   :  { %904 = vsyncpa [#allocation10 + $0x1], 1 }

</bundles_post_ra>
